<compile_context>
chip_gen: v7x
topology: tpu7x:2x2x1
jax: 0.10.0
libtpu: 0.0.40
codegen_flags: <defaults>
</compile_context>

<pallas_src>
import functools

import jax
import jax.numpy as jnp
from jax.experimental import pallas as pl
from jax.experimental.pallas import tpu as pltpu


def _round_up(x, m):
    return (x + m - 1) // m * m


def _convblock_kernel(x_ref, w_ref, scale_ref, shift_ref, o_ref,
                      *, kh, kw, wp, nwin):
    # x_ref:     (1, C, FLAT)     bf16 padded image, H*W flattened into lanes,
    #                             plus a zero tail so every tap slice is in-bounds
    # w_ref:     (OC, KH*KW*C)    bf16 weights, tap-major / channel-minor
    # scale_ref: (OC, 1)          f32 folded BN scale = gamma / sqrt(var + eps)
    # shift_ref: (OC, 1)          f32 folded BN shift = beta + (bias - mean) * scale
    # o_ref:     (1, OC, NWIN)    dense stride-1 conv over all padded anchors
    taps = []
    for i in range(kh):                          # static tap loop: slices only,
        for j in range(kw):                      # all FLOPs land in one matmul
            off = i * wp + j
            # contiguous unit-stride lane slice of the flattened image (C, NWIN)
            taps.append(x_ref[0, :, off:off + nwin])
    patches = jnp.concatenate(taps, axis=0)      # (KH*KW*C, NWIN), bf16

    # one MXU push: (OC, K) x (K, NWIN) -> (OC, NWIN), f32 accumulation
    acc = jnp.dot(w_ref[...], patches, preferred_element_type=jnp.float32)

    y = acc * scale_ref[...] + shift_ref[...]                    # folded BN (f32)
    o_ref[0] = jnp.where(y >= 0, y, 0.1 * y).astype(o_ref.dtype)  # LeakyReLU(0.1)


@functools.partial(jax.jit,
                   static_argnames=("stride", "padding", "eps", "out_dtype"))
def conv_block(x_nchw, weight, bias, gamma, beta, run_mean, run_var,
               *, stride, padding=0, eps=1e-5, out_dtype=jnp.float32):
    n, c, h, w = x_nchw.shape
    oc, ic, kh, kw = weight.shape
    assert ic == c
    hp, wp = h + 2 * padding, w + 2 * padding
    oh = (hp - kh) // stride + 1
    ow = (wp - kw) // stride + 1

    nwin = _round_up(hp * wp, 128)               # lane-dense output width
    max_off = (kh - 1) * wp + (kw - 1)
    flat = max_off + nwin                        # tap slices never go OOB

    # ---- layout prep (one fused XLA pass): NCHW is already channel-major, so
    # the lane dim is spatial.  Spatial zero-pad, flatten H*W, zero tail, bf16.
    x_pad = jnp.pad(x_nchw, ((0, 0), (0, 0),
                             (padding, padding), (padding, padding)))
    x_flat = x_pad.reshape(n, c, hp * wp)
    x_flat = jnp.pad(x_flat, ((0, 0), (0, 0), (0, flat - hp * wp)))
    x_flat = x_flat.astype(jnp.bfloat16)

    # weight (OC, IC, KH, KW) -> (OC, KH*KW*IC): tap-major, channel-minor,
    # matching the row order of the in-kernel patch matrix.
    w2 = jnp.transpose(weight, (0, 2, 3, 1)).reshape(oc, kh * kw * ic)
    w2 = w2.astype(jnp.bfloat16)

    # ---- fold BatchNorm (eval mode) + conv bias into a per-OC affine ----
    if bias is None:                             # Conv2d(bias=False) support
        bias = jnp.zeros((oc,), jnp.float32)
    scale = (gamma / jnp.sqrt(run_var + eps)).astype(jnp.float32)     # (OC,)
    shift = (beta + (bias - run_mean) * scale).astype(jnp.float32)    # (OC,)
    scale = scale.reshape(oc, 1)
    shift = shift.reshape(oc, 1)

    kernel = functools.partial(_convblock_kernel, kh=kh, kw=kw, wp=wp, nwin=nwin)

    flops = 2 * n * oc * (kh * kw * ic) * nwin
    bytes_accessed = (x_flat.size * 2 + w2.size * 2
                      + (scale.size + shift.size) * 4
                      + n * oc * nwin * jnp.dtype(out_dtype).itemsize)

    out = pl.pallas_call(
        kernel,
        out_shape=jax.ShapeDtypeStruct((n, oc, nwin), out_dtype),
        grid=(n,),
        in_specs=[
            pl.BlockSpec((1, c, flat), lambda b: (b, 0, 0)),        # one image
            pl.BlockSpec((oc, kh * kw * ic), lambda b: (0, 0)),     # full weights
            pl.BlockSpec((oc, 1), lambda b: (0, 0)),                # BN scale
            pl.BlockSpec((oc, 1), lambda b: (0, 0)),                # BN shift
        ],
        out_specs=pl.BlockSpec((1, oc, nwin), lambda b: (b, 0, 0)),
        compiler_params=pltpu.CompilerParams(
            dimension_semantics=("parallel",)),
        cost_estimate=pl.CostEstimate(flops=flops, transcendentals=0,
                                      bytes_accessed=bytes_accessed),
    )(x_flat, w2, scale, shift)

    # dense stride-1 map over padded anchors -> select the valid strided outputs
    full = out[:, :, :hp * wp].reshape(n, oc, hp, wp)
    return full[:, :, :(oh - 1) * stride + 1:stride,
                      :(ow - 1) * stride + 1:stride]


if __name__ == "__main__":
    # ConvBlock(in_channels=4, out_channels=8, kernel_size=3, stride=1, padding=1)
    in_channels, out_channels, kernel_size, stride, padding = 4, 8, 3, 1, 1

    key = jax.random.PRNGKey(0)
    kx, kwt, kb, kg, kbe, km, kv = jax.random.split(key, 7)

    x = jax.random.normal(kx, (2, in_channels, 16, 16), dtype=jnp.float32)
    weight = 0.1 * jax.random.normal(
        kwt, (out_channels, in_channels, kernel_size, kernel_size), jnp.float32)
    bias = 0.05 * jax.random.normal(kb, (out_channels,), jnp.float32)
    gamma = 1.0 + 0.1 * jax.random.normal(kg, (out_channels,), jnp.float32)
    beta = 0.1 * jax.random.normal(kbe, (out_channels,), jnp.float32)
    run_mean = 0.1 * jax.random.normal(km, (out_channels,), jnp.float32)
    run_var = jnp.abs(jax.random.normal(kv, (out_channels,), jnp.float32)) + 0.5

    y = conv_block(x, weight, bias, gamma, beta, run_mean, run_var,
                   stride=stride, padding=padding)
    jax.block_until_ready(y)
    assert y.shape == (2, out_channels, 16, 16), y.shape

    # lightweight self-check against a pure-JAX reference (bf16 MXU tolerance)
    ref = jax.lax.conv_general_dilated(
        x, weight, window_strides=(stride, stride),
        padding=[(padding, padding), (padding, padding)],
        dimension_numbers=("NCHW", "OIHW", "NCHW")) + bias.reshape(1, -1, 1, 1)
    ref = (ref - run_mean.reshape(1, -1, 1, 1)) / jnp.sqrt(
        run_var.reshape(1, -1, 1, 1) + 1e-5)
    ref = ref * gamma.reshape(1, -1, 1, 1) + beta.reshape(1, -1, 1, 1)
    ref = jnp.where(ref >= 0, ref, 0.1 * ref)
    assert jnp.allclose(y, ref, atol=5e-2, rtol=5e-2), \
        float(jnp.max(jnp.abs(y - ref)))

    print("KERNEL_OK")
</pallas_src>

<mosaic_0001>
module attributes {stable_mosaic.version = 11 : i64} {
  func.func @_convblock_kernel(%arg0: i32, %arg1: memref<1x4x422xbf16, #tpu.memory_space<vmem>>, %arg2: memref<8x36xbf16, #tpu.memory_space<vmem>>, %arg3: memref<8x1xf32, #tpu.memory_space<vmem>>, %arg4: memref<8x1xf32, #tpu.memory_space<vmem>>, %arg5: memref<1x8x384xf32, #tpu.memory_space<vmem>>) attributes {dimension_semantics = [#tpu.dimension_semantics<parallel>], iteration_bounds = array<i64: 2>, scalar_prefetch = 0 : i64, scratch_operands = 0 : i64, tpu.core_type = #tpu.core_type<tc>, window_params = [{transform_indices = @transform_0, window_bounds = array<i64: 1, 4, 422>}, {pipeline_mode = #tpu.pipeline_mode<synchronous>, transform_indices = @transform_1, window_bounds = array<i64: 8, 36>}, {pipeline_mode = #tpu.pipeline_mode<synchronous>, transform_indices = @transform_2, window_bounds = array<i64: 8, 1>}, {pipeline_mode = #tpu.pipeline_mode<synchronous>, transform_indices = @transform_3, window_bounds = array<i64: 8, 1>}, {transform_indices = @transform_4, window_bounds = array<i64: 1, 8, 384>}]} {
    %c0 = arith.constant 0 : index
    %c0_0 = arith.constant 0 : index
    %c0_1 = arith.constant 0 : index
    %0 = vector.load %arg1[%c0, %c0_0, %c0_1] : memref<1x4x422xbf16, #tpu.memory_space<vmem>>, vector<1x4x384xbf16>
    %1 = vector.shape_cast %0 : vector<1x4x384xbf16> to vector<4x384xbf16>
    %c0_2 = arith.constant 0 : index
    %c0_3 = arith.constant 0 : index
    %c1 = arith.constant 1 : index
    %2 = vector.load %arg1[%c0_2, %c0_3, %c1] : memref<1x4x422xbf16, #tpu.memory_space<vmem>>, vector<1x4x384xbf16>
    %3 = vector.shape_cast %2 : vector<1x4x384xbf16> to vector<4x384xbf16>
    %c0_4 = arith.constant 0 : index
    %c0_5 = arith.constant 0 : index
    %c2 = arith.constant 2 : index
    %4 = vector.load %arg1[%c0_4, %c0_5, %c2] : memref<1x4x422xbf16, #tpu.memory_space<vmem>>, vector<1x4x384xbf16>
    %5 = vector.shape_cast %4 : vector<1x4x384xbf16> to vector<4x384xbf16>
    %c0_6 = arith.constant 0 : index
    %c0_7 = arith.constant 0 : index
    %c18 = arith.constant 18 : index
    %6 = vector.load %arg1[%c0_6, %c0_7, %c18] : memref<1x4x422xbf16, #tpu.memory_space<vmem>>, vector<1x4x384xbf16>
    %7 = vector.shape_cast %6 : vector<1x4x384xbf16> to vector<4x384xbf16>
    %c0_8 = arith.constant 0 : index
    %c0_9 = arith.constant 0 : index
    %c19 = arith.constant 19 : index
    %8 = vector.load %arg1[%c0_8, %c0_9, %c19] : memref<1x4x422xbf16, #tpu.memory_space<vmem>>, vector<1x4x384xbf16>
    %9 = vector.shape_cast %8 : vector<1x4x384xbf16> to vector<4x384xbf16>
    %c0_10 = arith.constant 0 : index
    %c0_11 = arith.constant 0 : index
    %c20 = arith.constant 20 : index
    %10 = vector.load %arg1[%c0_10, %c0_11, %c20] : memref<1x4x422xbf16, #tpu.memory_space<vmem>>, vector<1x4x384xbf16>
    %11 = vector.shape_cast %10 : vector<1x4x384xbf16> to vector<4x384xbf16>
    %c0_12 = arith.constant 0 : index
    %c0_13 = arith.constant 0 : index
    %c36 = arith.constant 36 : index
    %12 = vector.load %arg1[%c0_12, %c0_13, %c36] : memref<1x4x422xbf16, #tpu.memory_space<vmem>>, vector<1x4x384xbf16>
    %13 = vector.shape_cast %12 : vector<1x4x384xbf16> to vector<4x384xbf16>
    %c0_14 = arith.constant 0 : index
    %c0_15 = arith.constant 0 : index
    %c37 = arith.constant 37 : index
    %14 = vector.load %arg1[%c0_14, %c0_15, %c37] : memref<1x4x422xbf16, #tpu.memory_space<vmem>>, vector<1x4x384xbf16>
    %15 = vector.shape_cast %14 : vector<1x4x384xbf16> to vector<4x384xbf16>
    %c0_16 = arith.constant 0 : index
    %c0_17 = arith.constant 0 : index
    %c38 = arith.constant 38 : index
    %16 = vector.load %arg1[%c0_16, %c0_17, %c38] : memref<1x4x422xbf16, #tpu.memory_space<vmem>>, vector<1x4x384xbf16>
    %17 = vector.shape_cast %16 : vector<1x4x384xbf16> to vector<4x384xbf16>
    %18 = tpu.concatenate %1, %3, %5, %7, %9, %11, %13, %15, %17 in 0 : vector<4x384xbf16>, vector<4x384xbf16>, vector<4x384xbf16>, vector<4x384xbf16>, vector<4x384xbf16>, vector<4x384xbf16>, vector<4x384xbf16>, vector<4x384xbf16>, vector<4x384xbf16> -> vector<36x384xbf16>
    %c0_18 = arith.constant 0 : index
    %c0_19 = arith.constant 0 : index
    %19 = vector.load %arg2[%c0_18, %c0_19] : memref<8x36xbf16, #tpu.memory_space<vmem>>, vector<8x36xbf16>
    %cst = arith.constant dense<0.000000e+00> : vector<8x384xf32>
    %20 = tpu.matmul %19, %18, %cst {dimension_numbers = #tpu.dot_dimension_numbers<[1], [0], [0], [1], [0, 0, 1, 1], [], []>} : vector<8x36xbf16>, vector<36x384xbf16>, vector<8x384xf32> -> vector<8x384xf32>
    %c0_20 = arith.constant 0 : index
    %c0_21 = arith.constant 0 : index
    %21 = vector.load %arg3[%c0_20, %c0_21] : memref<8x1xf32, #tpu.memory_space<vmem>>, vector<8x1xf32>
    %22 = vector.broadcast %21 : vector<8x1xf32> to vector<8x384xf32>
    %23 = arith.mulf %20, %22 : vector<8x384xf32>
    %c0_22 = arith.constant 0 : index
    %c0_23 = arith.constant 0 : index
    %24 = vector.load %arg4[%c0_22, %c0_23] : memref<8x1xf32, #tpu.memory_space<vmem>>, vector<8x1xf32>
    %25 = vector.broadcast %24 : vector<8x1xf32> to vector<8x384xf32>
    %26 = arith.addf %23, %25 : vector<8x384xf32>
    %cst_24 = arith.constant 0.000000e+00 : f32
    %27 = vector.broadcast %cst_24 : f32 to vector<8x384xf32>
    %28 = arith.cmpf oge, %26, %27 : vector<8x384xf32>
    %cst_25 = arith.constant 1.000000e-01 : f32
    %29 = vector.broadcast %cst_25 : f32 to vector<8x384xf32>
    %30 = arith.mulf %29, %26 : vector<8x384xf32>
    %31 = arith.select %28, %26, %30 : vector<8x384xi1>, vector<8x384xf32>
    %c0_26 = arith.constant 0 : index
    %c0_27 = arith.constant 0 : index
    %c0_28 = arith.constant 0 : index
    %32 = vector.load %arg5[%c0_26, %c0_27, %c0_28] : memref<1x8x384xf32, #tpu.memory_space<vmem>>, vector<1x8x384xf32>
    %33 = vector.shape_cast %32 : vector<1x8x384xf32> to vector<8x384xf32>
    %34 = vector.shape_cast %31 : vector<8x384xf32> to vector<1x8x384xf32>
    tpu.vector_store %arg5[%c0_26, %c0_27, %c0_28], %34 {strides = array<i32>} : memref<1x8x384xf32, #tpu.memory_space<vmem>>, vector<1x8x384xf32>,
    return
  }
  func.func @transform_0(%arg0: i32) -> (i32, i32, i32) {
    %c0_i32 = arith.constant 0 : i32
    %c0_i32_0 = arith.constant 0 : i32
    %c0_i32_1 = arith.constant 0 : i32
    return %arg0, %c0_i32, %c0_i32_0 : i32, i32, i32
  }
  func.func @transform_1(%arg0: i32) -> (i32, i32) {
    %c0_i32 = arith.constant 0 : i32
    %c0_i32_0 = arith.constant 0 : i32
    %c0_i32_1 = arith.constant 0 : i32
    return %c0_i32, %c0_i32_0 : i32, i32
  }
  func.func @transform_2(%arg0: i32) -> (i32, i32) {
    %c0_i32 = arith.constant 0 : i32
    %c0_i32_0 = arith.constant 0 : i32
    %c0_i32_1 = arith.constant 0 : i32
    return %c0_i32, %c0_i32_0 : i32, i32
  }
  func.func @transform_3(%arg0: i32) -> (i32, i32) {
    %c0_i32 = arith.constant 0 : i32
    %c0_i32_0 = arith.constant 0 : i32
    %c0_i32_1 = arith.constant 0 : i32
    return %c0_i32, %c0_i32_0 : i32, i32
  }
  func.func @transform_4(%arg0: i32) -> (i32, i32, i32) {
    %c0_i32 = arith.constant 0 : i32
    %c0_i32_0 = arith.constant 0 : i32
    %c0_i32_1 = arith.constant 0 : i32
    return %arg0, %c0_i32, %c0_i32_0 : i32, i32, i32
  }
}

</mosaic_0001>

<bundles_post_ra>
// kernel: conv_block.1
= control target key start
LH: loop header
LB: loop body
LE: loop exit
PB: predicated region body
PF: predicated region fallthrough
CT: control target
= control target key end

     0   :  { %s674_s15 = smov 0   ;;  %s749_s0 = inlined_call_operand.vmem [shape: bf16[2,4,422], index: 0, kind: input, shape index: {}]   ;;  %s750_s1 = inlined_call_operand.vmem [shape: bf16[8,36], index: 1, kind: input, shape index: {}]   ;;  %s751_s2 = inlined_call_operand.vmem [shape: f32[8,1], index: 2, kind: input, shape index: {}]   ;;  %s752_s3 = inlined_call_operand.vmem [shape: f32[8,1], index: 3, kind: input, shape index: {}]   ;;  %s753_s4 = inlined_call_operand.vmem [shape: f32[2,8,384], index: 4, kind: output, shape index: {}]  }
   0x1 LB: > { %s575_s16 = sadd.s32 4294967295, %s635_s15   ;;  %p579_p0 = scmp.ge.s32.totalorder %s635_s15, 1  ;;  %s635_s15 = sphi %s674_s15, %s14_s15  }
   0x2   : > { %p162_p1 = scmp.lt.s32.totalorder %s635_s15, 3 }
   0x4   : > { %p163_p2 = pnand %p579_p0, %p162_p1 }
   0x5   : > { %p188_p3 = scmp.lt.s32.totalorder (!%p163_p2), %s575_s16, 1  ;;  %v206_v0 = vlaneseq (!%p163_p2)  ;;  %v637_v1 = vmov (!%p163_p2), 1983009808   ;;  %s638_s21 = smov (!%p163_p2), 126   ;;  %v640_v20 = vmov (!%p163_p2), 0.0   ;;  %v646_v23 = vmov (!%p163_p2), 0  }
   0x6   : > { %166 = sbr.rel (%p163_p2) target bundleno = 420 (0x1a4), region = 36  ;;  %v204_v2 = vunpack.c.l.s4 (!%p163_p2), %v637_v1  ;;  %s639_s22 = smov (!%p163_p2), 127   ;;  %593 = vmatprep.subr.bf16.mxu1 (!%p163_p2), %v640_v20  ;;  %441 = vmatprep.mubr.bf16.mxu0 (!%p163_p2), %v646_v23  ;;  %vm647_vm0 = vmmov (!%p163_p2), 0   ;;  %v490_v24 = vld [vmem:[%s751_s2] sm:$0xff] (!%p163_p2)  ;;  %vm244_vm1 = vcmask (!%p163_p2), 1039360   ;;  %vm266_vm2 = vcmask (!%p163_p2), 1031168  }
   0x7   : > { %v207_v3 = vshrl.u32 (!%p163_p2), %v206_v0, 7  ;;  %s641_s23 = smov (!%p163_p2), 110   ;;  %s642_s24 = smov (!%p163_p2), 109   ;;  %599 = vmatprep.mubr.msk.bf16.mxu1 (!%p163_p2), %vm647_vm0, %v640_v20  ;;  %624 = vset.pattern.permute.xlu0 (!%p163_p2), %v646_v23  ;;  %v499_v25 = vld [vmem:[%s752_s3] sm:$0xff] (!%p163_p2)  ;;  %vm344_vm3 = vcmask (!%p163_p2), 1041408   ;;  %vm279_vm4 = vcmask (!%p163_p2), 900096  }
   0x8   : > { %v205_v4 = vunpack.c.0.s8 (!%p163_p2), %v204_v2  ;;  %s643_s25 = smov (!%p163_p2), 108   ;;  %s644_s26 = smov (!%p163_p2), 92   ;;  %625 = vset.pattern.permute.xlu1 (!%p163_p2), %v646_v23  ;;  %vm361_vm5 = vcmask (!%p163_p2), 1045504   ;;  %vm354_vm6 = vcmask (!%p163_p2), 1043456   ;;  %vm304_vm7 = vcmask (!%p163_p2), 883712  }
   0x9   : > { %s645_s27 = smov (!%p163_p2), 91   ;;  %s648_s28 = smov (!%p163_p2), 90   ;;  %vm316_vm8 = vcmask (!%p163_p2), 752640   ;;  %vm292_vm9 = vcmask (!%p163_p2), 891904   ;;  %vm328_vm10 = vcmask (!%p163_p2), 744448   ;;  %vm340_vm11 = vcmask (!%p163_p2), 736256  }
   0xa   : > { %v208_v5 = vsub.s32 (!%p163_p2), %v205_v4, %v207_v3  ;;  %vm396_vm12 = vcmask (!%p163_p2), 293888  }
   0xd   : > { %s755_s16 = smov (!%p188_p3, %s575_s16), 1 }
   0xe   : > { %s588_s17 = sshll.u32 %s755_s16, 3  ;;  %s603_s9 = smul.u32 24, %s755_s16 }
   0xf   : > { %s192_s20 = scalar_lea.vmem %s749_s0, %s588_s17 }
  0x10   : > { %v200_v6 = vld [vmem:[%s192_s20] sm:$0xff]  ;;  %s197_s12 = scalar_lea.vmem %s753_s4, %s603_s9 }
  0x11   : > { %v199_v7 = vld [vmem:[%s192_s20] sm:$0x3f]  ;;  %v233_v8 = vrot.slane %v200_v6, %v208_v5  ;;  %v219_v9 = vcombine.low %v200_v6, %v200_v6  ;;  %v248_v14 = vcombine.high %v200_v6, %v200_v6 }
  0x12   : > { %v202_v10 = vcombine.high %v199_v7, %v199_v7  ;;  %v688_v11 = vrot.slane %v199_v7, %v208_v5 }
  0x13   : > { %260 = vrot.lane.b32.xlu1 %v233_v8, %s638_s21  ;;  %240 = vrot.lane.b32.xlu0 %v233_v8, %s639_s22  ;;  %v256_v12 = vcombine.low %v233_v8, %v233_v8  ;;  %v226_v13 = vrot.slane %v219_v9, %v208_v5  ;;  %v235_v16 = vcombine.high %v233_v8, %v233_v8 }
  0x14   : > { %v690_v15 = vrot.slane %v202_v10, %v208_v5  ;;  %v255_v18 = vrot.slane %v248_v14, %v208_v5  ;;  %v217_v32 = vcombine.high %v688_v11, %v688_v11 }
  0x15   : > { %v234_v17 = vcombine.high %v226_v13, %v226_v13  ;;  %v270_v21 = vcombine.low %v226_v13, %v226_v13 }
  0x16   : > { %v257_v19 = vcombine.low %v255_v18, %v255_v18  ;;  %v283_v22 = vcombine.high %v255_v18, %v255_v18 }
  0x17   : > { %258 = vrot.lane.b32.xlu0 %v256_v12, %s638_s21  ;;  %236 = vrot.lane.b32.xlu1 %v226_v13, %s639_s22 }
  0x1b   : > { %242 = vrot.lane.b32.xlu1 %v235_v16, %s639_s22  ;;  %238 = vrot.lane.b32.xlu0 %v234_v17, %s639_s22 }
  0x1f   : > { %273 = vrot.lane.b32.xlu1 %v226_v13, %s641_s23  ;;  %262 = vrot.lane.b32.xlu0 %v257_v19, %s638_s21 }
  0x23   : > { %264 = vrot.lane.b32.xlu1 %v255_v18, %s638_s21  ;;  %275 = vrot.lane.b32.xlu0 %v256_v12, %s641_s23 }
  0x27   : > { %277 = vrot.lane.b32.xlu1 %v233_v8, %s641_s23  ;;  %271 = vrot.lane.b32.xlu0 %v270_v21, %s641_s23 }
  0x2b   : > { %288 = vrot.lane.b32.xlu1 %v255_v18, %s642_s24  ;;  %286 = vrot.lane.b32.xlu0 %v235_v16, %s642_s24 }
  0x2f   : > { %300 = vrot.lane.b32.xlu1 %v233_v8, %s643_s25  ;;  %298 = vrot.lane.b32.xlu0 %v234_v17, %s643_s25 }
  0x33   : > { %296 = vrot.lane.b32.xlu1 %v226_v13, %s643_s25  ;;  %284 = vrot.lane.b32.xlu0 %v233_v8, %s642_s24 }
  0x37   : > { %312 = vrot.lane.b32.xlu1 %v257_v19, %s644_s26  ;;  %310 = vrot.lane.b32.xlu0 %v233_v8, %s644_s26 }
  0x3b   : > { %302 = vrot.lane.b32.xlu1 %v235_v16, %s643_s25  ;;  %290 = vrot.lane.b32.xlu0 %v283_v22, %s642_s24 }
  0x3f   : > { %322 = vrot.lane.b32.xlu1 %v226_v13, %s645_s27  ;;  %308 = vrot.lane.b32.xlu0 %v256_v12, %s644_s26 }
  0x43   : > { %314 = vrot.lane.b32.xlu1 %v255_v18, %s644_s26  ;;  %324 = vrot.lane.b32.xlu0 %v256_v12, %s645_s27 }
  0x47   : > { %326 = vrot.lane.b32.xlu1 %v233_v8, %s645_s27  ;;  %320 = vrot.lane.b32.xlu0 %v270_v21, %s645_s27 }
  0x4b   : > { %334 = vrot.lane.b32.xlu1 %v235_v16, %s648_s28  ;;  %332 = vrot.lane.b32.xlu0 %v233_v8, %s648_s28 }
  0x4f   : > { %338 = vrot.lane.b32.xlu1 %v283_v22, %s648_s28  ;;  %336 = vrot.lane.b32.xlu0 %v255_v18, %s648_s28 }
  0x53   : > { %493 = vperm.xlu0 %624, %v490_v24   ;;  %502 = vperm.xlu1 %625, %v499_v25  }
  0x85   : > { %v261_v26 = vpop.permute.xlu1 %260  ;;  %v241_v27 = vpop.permute.xlu0 %240 }
  0x89   : > { %v259_v28 = vpop.permute.xlu0 %258  ;;  %v237_v29 = vpop.permute.xlu1 %236 }
  0x8a   : > { %v267_v47 = vsel %vm266_vm2, %v259_v28, %v261_v26 }
  0x8d   : > { %v243_v30 = vpop.permute.xlu1 %242  ;;  %v239_v31 = vpop.permute.xlu0 %238 }
  0x8e   : > { %v246_v35 = vsel %vm244_vm1, %v239_v31, %v241_v27  ;;  %v245_v37 = vsel %vm244_vm1, %v237_v29, %v239_v31  ;;  %v247_v41 = vsel %vm244_vm1, %v241_v27, %v243_v30 }
  0x8f   : > { %v350_v38 = vsel %vm344_vm3, %v217_v32, %v246_v35  ;;  %v347_v44 = vsel %vm344_vm3, %v688_v11, %v245_v37  ;;  %v353_v48 = vsel %vm344_vm3, %v690_v15, %v247_v41 }
  0x90   : > { %v356_v53 = vsel %vm354_vm6, %v347_v44, %v267_v47 }
  0x91   : > { %v274_v33 = vpop.permute.xlu1 %273  ;;  %v263_v34 = vpop.permute.xlu0 %262 }
  0x92   : > { %v268_v36 = vsel %vm266_vm2, %v261_v26, %v263_v34 }
  0x93   : > { %v358_v43 = vsel %vm354_vm6, %v350_v38, %v268_v36 }
  0x95   : > { %v265_v39 = vpop.permute.xlu1 %264  ;;  %v276_v40 = vpop.permute.xlu0 %275 }
  0x96   : > { %v281_v42 = vsel %vm279_vm4, %v274_v33, %v276_v40  ;;  %v269_v45 = vsel %vm266_vm2, %v263_v34, %v265_v39 }
  0x97   : > { %v366_v46 = vsel %vm361_vm5, %v358_v43, %v281_v42  ;;  %v360_v54 = vsel %vm354_vm6, %v353_v48, %v269_v45 }
  0x98   : > { %409 = vmatprep.subr.bf16.mxu0 %v366_v46 }
  0x99   : > { %v278_v49 = vpop.permute.xlu1 %277  ;;  %v272_v50 = vpop.permute.xlu0 %271 }
  0x9a   : > { %v282_v51 = vsel %vm279_vm4, %v276_v40, %v278_v49  ;;  %v280_v52 = vsel %vm279_vm4, %v272_v50, %v274_v33  ;;  %v395_v40 = vld [vmem:[%s750_s1] sm:$0xf] }
  0x9b   : > { %v363_v55 = vsel %vm361_vm5, %v356_v53, %v280_v52  ;;  %v369_v56 = vsel %vm361_vm5, %v360_v54, %v282_v51 }
  0x9c   : > { %410 = vmatpush1.bf16.msra.mxu0 %v363_v55  ;;  %594 = vmatpush3.bf16.msra.mxu1 %v369_v56 }
  0x9d   : > { %v289_v57 = vpop.permute.xlu1 %288  ;;  %v287_v58 = vpop.permute.xlu0 %286  ;;  %595 = vmatprep.subr.bf16.mxu1 %v640_v20 }
  0x9e   : > { %v294_v7 = vsel %vm292_vm9, %v287_v58, %v289_v57 }
  0xa1   : > { %v301_v59 = vpop.permute.xlu1 %300  ;;  %v299_v60 = vpop.permute.xlu0 %298 }
  0xa2   : > { %v306_v5 = vsel %vm304_vm7, %v299_v60, %v301_v59 }
  0xa3   : > { %v376_v8 = vsel %vm344_vm3, %v294_v7, %v306_v5 }
  0xa5   : > { %v297_v61 = vpop.permute.xlu1 %296  ;;  %v285_v62 = vpop.permute.xlu0 %284 }
  0xa6   : > { %v305_v9 = vsel %vm304_vm7, %v297_v61, %v299_v60  ;;  %v293_v10 = vsel %vm292_vm9, %v285_v62, %v287_v58 }
  0xa7   : > { %v373_v21 = vsel %vm344_vm3, %v293_v10, %v305_v9 }
  0xa9   : > { %v313_v63 = vpop.permute.xlu1 %312  ;;  %v311_v0 = vpop.permute.xlu0 %310 }
  0xaa   : > { %v318_v6 = vsel %vm316_vm8, %v311_v0, %v313_v63 }
  0xab   : > { %v383_v16 = vsel %vm354_vm6, %v376_v8, %v318_v6 }
  0xad   : > { %v303_v1 = vpop.permute.xlu1 %302  ;;  %v291_v2 = vpop.permute.xlu0 %290 }
  0xae   : > { %v307_v13 = vsel %vm304_vm7, %v301_v59, %v303_v1  ;;  %v295_v14 = vsel %vm292_vm9, %v289_v57, %v291_v2 }
  0xaf   : > { %v379_v22 = vsel %vm344_vm3, %v295_v14, %v307_v13 }
  0xb1   : > { %v323_v3 = vpop.permute.xlu1 %322  ;;  %v309_v4 = vpop.permute.xlu0 %308 }
  0xb2   : > { %v317_v17 = vsel %vm316_vm8, %v309_v4, %v311_v0 }
  0xb3   : > { %v381_v27 = vsel %vm354_vm6, %v373_v21, %v317_v17 }
  0xb5   : > { %v315_v11 = vpop.permute.xlu1 %314  ;;  %v325_v12 = vpop.permute.xlu0 %324 }
  0xb6   : > { %v330_v15 = vsel %vm328_vm10, %v323_v3, %v325_v12  ;;  %v319_v18 = vsel %vm316_vm8, %v313_v63, %v315_v11 }
  0xb7   : > { %v390_v19 = vsel %vm361_vm5, %v383_v16, %v330_v15  ;;  %v385_v28 = vsel %vm354_vm6, %v379_v22, %v319_v18 }
  0xb8   : > { %411 = vmatprep.subr.bf16.mxu0 %v390_v19 }
  0xb9   : > { %v327_v23 = vpop.permute.xlu1 %326  ;;  %v321_v24 = vpop.permute.xlu0 %320 }
  0xba   : > { %v331_v25 = vsel %vm328_vm10, %v325_v12, %v327_v23  ;;  %v329_v26 = vsel %vm328_vm10, %v321_v24, %v323_v3 }
  0xbb   : > { %v387_v29 = vsel %vm361_vm5, %v381_v27, %v329_v26  ;;  %v393_v30 = vsel %vm361_vm5, %v385_v28, %v331_v25 }
  0xbc   : > { %412 = vmatpush1.bf16.msra.mxu0 %v387_v29  ;;  %596 = vmatpush3.bf16.msra.mxu1 %v393_v30 }
  0xbd   : > { %v335_v31 = vpop.permute.xlu1 %334  ;;  %v333_v32 = vpop.permute.xlu0 %332  ;;  %597 = vmatprep.subr.bf16.mxu1 %v640_v20 }
  0xbe   : > { %v341_v33 = vsel %vm340_vm11, %v333_v32, %v335_v31 }
  0xbf   : > { %v401_v38 = vsel %vm344_vm3, %v341_v33, 0 }
  0xc1   : > { %v339_v34 = vpop.permute.xlu1 %338  ;;  %v337_v35 = vpop.permute.xlu0 %336 }
  0xc2   : > { %v342_v36 = vsel %vm340_vm11, %v335_v31, %v337_v35  ;;  %v343_v37 = vsel %vm340_vm11, %v337_v35, %v339_v34 }
  0xc3   : > { %583 = vmatprep.subr.msk.bf16.mxu0 %vm344_vm3, %v342_v36  ;;  %v407_v39 = vsel %vm344_vm3, %v343_v37, 0 }
  0xc4   : > { %414 = vmatpush1.bf16.msra.mxu0 %v401_v38  ;;  %598 = vmatpush3.bf16.msra.mxu1 %v407_v39 }
  0xc7   : > { %584 = vmatmul.mubr.msk.bf16.vlgmr.msra.gmra.mrb[0].mxu0 %vm396_vm12, %v395_v40  ;;  %600 = vmatmul.mubr.msk.bf16.vlgmr.msra.gmra.mrb[0].mxu1 %vm396_vm12, %v395_v40 }
  0xd2   : > { %v494_v20 = vpop.permute.xlu0 %493  ;;  %v503_v41 = vpop.permute.xlu1 %502 }
 0x19a   : > { %v443_v42 = vpop.f32.mrb[0].mxu0  ;;  %v484_v43 = vpop.f32.mrb[0].mxu1 }
 0x19b   : > { %v496_v44 = vmul.f32 %v494_v20, %v443_v42  ;;  %v498_v45 = vmul.f32 %v494_v20, %v484_v43  ;;  %v445_v46 = vpop.f32.mrb[1].mxu0  ;;  %v601_v47 = vpop.f32.mrb[1].mxu1 }
 0x19c   : > { %v497_v48 = vmul.f32 %v494_v20, %v445_v46  ;;  %v447_v49 = vpop.f32.mrb[2].mxu0  ;;  %v487_v50 = vpop.f32.mrb[2].mxu1 }
 0x19d   : > { %v505_v51 = vadd.f32 %v503_v41, %v496_v44  ;;  %v507_v52 = vadd.f32 %v503_v41, %v498_v45  ;;  %v448_v53 = vpop.f32.mrb[3].mxu0  ;;  %v602_v54 = vpop.f32.mrb[3].mxu1 }
 0x19e   : > { %v506_v55 = vadd.f32 %v503_v41, %v497_v48 }
 0x19f   : > { %vm508_vm13 = vcmp.ge.f32.partialorder %v505_v51, 0.0  ;;  %vm510_vm14 = vcmp.ge.f32.partialorder %v507_v52, 0.0  ;;  %v511_v56 = vmul.f32 0.1, %v505_v51  ;;  %v513_v57 = vmul.f32 0.1, %v507_v52 }
 0x1a0   : > { %vm509_vm15 = vcmp.ge.f32.partialorder %v506_v55, 0.0  ;;  %v512_v58 = vmul.f32 0.1, %v506_v55 }
 0x1a1   : > { %v514_v59 = vsel %vm508_vm13, %v505_v51, %v511_v56  ;;  %v516_v60 = vsel %vm510_vm14, %v507_v52, %v513_v57 }
 0x1a2   : > { %v515_v61 = vsel %vm509_vm15, %v506_v55, %v512_v58  ;;  %517 = vst [vmem:[%s197_s12] sm:$0xff] %v514_v59  ;;  %519 = vst [vmem:[%s197_s12 + $0x10] sm:$0xff] %v516_v60 }
 0x1a3   : > { %518 = vst [vmem:[%s197_s12 + $0x8] sm:$0xff] %v515_v61 }
 0x1a4 PF: > { %s14_s15 = sadd.s32 1, %s635_s15  }
 0x1a5   : > { %p11_p4 = scmp.ge.s32.totalorder %s14_s15, 4  }
 0x1a7   :  { %13 = sbr.rel (!%p11_p4) target bundleno = 1 (0x1), region = 66 }

</bundles_post_ra>
